<compile_context>
chip_gen: v5e
topology: v5e:2x2
jax: 0.10.0
libtpu: 0.0.40
codegen_flags: <defaults>
</compile_context>

<pallas_src>
import jax
import jax.numpy as jnp
from jax.experimental import pallas as pl
from jax.experimental.pallas import tpu as pltpu

STATE_DIM = 75
ACTION_DIM = 28
HIDDEN = 30
LANE = 128
MAX_TB = 8192  # keeps double-buffered f32 tiles inside v5e's 16 MiB scoped VMEM


def _round_up(x, m):
    return ((x + m - 1) // m) * m


def _make_critic_kernel(n_in):
    """Kernel over refs: (x_0..x_{n-1}, w_0..w_{n-1}, b_hidden, wo, bo, out)."""

    def kernel(*refs):
        x_refs = refs[:n_in]
        w_refs = refs[n_in:2 * n_in]
        bh_ref, wo_ref, bo_ref, o_ref = refs[2 * n_in:]

        # Hidden layer: MXU matmuls against VMEM-resident pre-transposed weights.
        h = jnp.dot(x_refs[0][...], w_refs[0][...],
                    preferred_element_type=jnp.float32)
        for x_ref, w_ref in zip(x_refs[1:], w_refs[1:]):
            h = h + jnp.dot(x_ref[...], w_ref[...],
                            preferred_element_type=jnp.float32)
        net = jnp.maximum(h + bh_ref[...], 0.0)              # (TB, HIDDEN) f32

        # Output layer (fan-out = 1), lane-dense: contract the HIDDEN axis of
        # wo (1,H) with that of net (TB,H) -> (1, TB).  The MXU has full slack
        # (kernel is DMA-bound) and the result lands lane-dense, so the store
        # is a full-width vst plus one contiguous writeback DMA per step.
        q = jnp.einsum('oh,bh->ob', wo_ref[...], net,
                       preferred_element_type=jnp.float32)
        o_ref[...] = q + bo_ref[0, 0]                         # bo scalar (SMEM)

    return kernel


def _critic_pallas(xs, ws, b_hidden, wo_row, bo, *, tb):
    """Shared wrapper.  xs: list of (B, F_i) f32; ws: list of (F_i, HIDDEN) f32."""
    B = xs[0].shape[0]
    tb = min(int(tb), MAX_TB)

    # Batch tiling: big tiles amortize the ~0.35us per-grid-step overhead; at
    # least 2 tiles once B >= 2*128 so the "parallel" batch axis splits across
    # v7x's two TensorCores.  Multi-tile TB is a multiple of 128 so the
    # lane-dense (1, TB) output block satisfies the (8,128) block constraint.
    num_tiles = max(1, pl.cdiv(B, tb))
    if B >= 2 * LANE:
        num_tiles = max(2, num_tiles)
    if num_tiles == 1:
        TB = _round_up(B, 8)
    else:
        TB = _round_up(pl.cdiv(B, num_tiles), LANE)
    B_pad = _round_up(B, TB)
    grid = (B_pad // TB,)

    if B_pad != B:
        # Padded rows compute relu(b_hidden).wo + bo and are sliced off below.
        xs = [jnp.pad(x, ((0, B_pad - B), (0, 0))) for x in xs]

    def resident(shape):
        # Constant index_map -> block stays VMEM-resident across grid steps.
        return pl.BlockSpec(shape, lambda i: (0,) * len(shape))

    in_specs = (
        [pl.BlockSpec((TB, x.shape[1]), lambda i: (i, 0)) for x in xs]
        + [resident(w.shape) for w in ws]
        + [resident(b_hidden.shape),
           resident(wo_row.shape),
           pl.BlockSpec(memory_space=pltpu.MemorySpace.SMEM)]   # bo scalar
    )

    feat = sum(x.shape[1] for x in xs)
    flops = 2 * B_pad * HIDDEN * (feat + 1)
    bytes_accessed = 4 * (B_pad * (feat + 1) + (feat + 2) * HIDDEN + 1)

    out = pl.pallas_call(
        _make_critic_kernel(len(xs)),
        out_shape=jax.ShapeDtypeStruct((1, B_pad), jnp.float32),
        grid=grid,
        in_specs=in_specs,
        out_specs=pl.BlockSpec((1, TB), lambda i: (0, i)),
        compiler_params=pltpu.CompilerParams(
            dimension_semantics=("parallel",)),
        cost_estimate=pl.CostEstimate(
            flops=flops, transcendentals=0, bytes_accessed=bytes_accessed),
    )(*xs, *ws, b_hidden, wo_row, bo)

    return out[0, :B].reshape(B, 1)


def prepare_params(params):
    """One-time host-side prep: pre-transpose weights, fuse hidden biases,
    stack [Ws^T; Wa^T] for the fused-input path."""
    ws, bs, wa, ba, wo, bo = params
    ws_t = jnp.asarray(ws, jnp.float32).T                           # (75, 30)
    wa_t = jnp.asarray(wa, jnp.float32).T                           # (28, 30)
    return {
        "ws_t": ws_t,
        "wa_t": wa_t,
        "w_sa": jnp.concatenate([ws_t, wa_t], axis=0),              # (103, 30)
        "b_hidden": (bs + ba).reshape(1, HIDDEN).astype(jnp.float32),
        "wo_row": jnp.asarray(wo, jnp.float32).reshape(1, HIDDEN),
        "bo": jnp.asarray(bo, jnp.float32).reshape(1, 1),
    }


def critic_forward(s, a, prepared, *, tb=4096):
    """s: (B, 75) f32, a: (B, 28) f32 -> (B, 1) f32.  Matches Critic.forward."""
    return _critic_pallas([s, a], [prepared["ws_t"], prepared["wa_t"]],
                          prepared["b_hidden"], prepared["wo_row"],
                          prepared["bo"], tb=tb)


def critic_forward_fused(sa, prepared, *, tb=4096):
    """sa: (B, 103) f32, pre-concatenated [s|a] emitted by the data producer."""
    return _critic_pallas([sa], [prepared["w_sa"]],
                          prepared["b_hidden"], prepared["wo_row"],
                          prepared["bo"], tb=tb)


def init_params(key):
    """Synthetic init mirroring Critic.__init__ (weights ~ N(0, 0.1))."""
    k = jax.random.split(key, 6)
    ws = 0.1 * jax.random.normal(k[0], (HIDDEN, STATE_DIM), jnp.float32)
    bs = jax.random.uniform(k[1], (1, HIDDEN), jnp.float32,
                            -1.0 / STATE_DIM ** 0.5, 1.0 / STATE_DIM ** 0.5)
    wa = 0.1 * jax.random.normal(k[2], (HIDDEN, ACTION_DIM), jnp.float32)
    ba = jax.random.uniform(k[3], (1, HIDDEN), jnp.float32,
                            -1.0 / ACTION_DIM ** 0.5, 1.0 / ACTION_DIM ** 0.5)
    wo = 0.1 * jax.random.normal(k[4], (1, HIDDEN), jnp.float32)
    bo = jax.random.uniform(k[5], (1, 1), jnp.float32,
                            -1.0 / HIDDEN ** 0.5, 1.0 / HIDDEN ** 0.5)
    return ws, bs, wa, ba, wo, bo


if __name__ == "__main__":
    key = jax.random.PRNGKey(0)
    k_s, k_a, k_p, k_s2, k_a2 = jax.random.split(key, 5)

    raw_params = init_params(k_p)
    prepared = prepare_params(raw_params)
    ws, bs, wa, ba, wo, bo = raw_params

    def ref_fwd(s, a):
        return jnp.maximum(s @ ws.T + bs + a @ wa.T + ba, 0.0) @ wo.T + bo

    def close(x, y):
        return jnp.allclose(x, y, atol=2e-5, rtol=2e-5)

    # Small demo batch: single-tile path.
    B = 8
    s = jax.random.normal(k_s, (B, STATE_DIM), jnp.float32)
    a = jax.random.normal(k_a, (B, ACTION_DIM), jnp.float32)
    q = jax.block_until_ready(critic_forward(s, a, prepared))
    assert q.shape == (B, 1)
    assert close(q, ref_fwd(s, a))

    # Fused [s|a] path (producer-side concatenation -> one DMA stream).
    sa = jnp.concatenate([s, a], axis=1)
    q_fused = jax.block_until_ready(critic_forward_fused(sa, prepared))
    assert close(q_fused, ref_fwd(s, a))

    # Multi-tile path: exercises the >=2-step grid (v7x megacore split),
    # 128-aligned lane-dense output blocks, and batch padding/slicing.
    B2 = 300
    s2 = jax.random.normal(k_s2, (B2, STATE_DIM), jnp.float32)
    a2 = jax.random.normal(k_a2, (B2, ACTION_DIM), jnp.float32)
    q2 = jax.block_until_ready(critic_forward(s2, a2, prepared))
    assert q2.shape == (B2, 1)
    assert close(q2, ref_fwd(s2, a2))

    # TODO(synk): checkpoint save/load from the PyTorch module is file I/O and
    # intentionally not reproduced here.
    print("KERNEL_OK")
</pallas_src>

<mosaic_0001>
module attributes {stable_mosaic.version = 11 : i64} {
  func.func @kernel(%arg0: i32, %arg1: memref<8x75xf32, #tpu.memory_space<vmem>>, %arg2: memref<8x28xf32, #tpu.memory_space<vmem>>, %arg3: memref<75x30xf32, #tpu.memory_space<vmem>>, %arg4: memref<28x30xf32, #tpu.memory_space<vmem>>, %arg5: memref<1x30xf32, #tpu.memory_space<vmem>>, %arg6: memref<1x30xf32, #tpu.memory_space<vmem>>, %arg7: memref<1x1xf32, #tpu.memory_space<smem>>, %arg8: memref<1x8xf32, #tpu.memory_space<vmem>>) attributes {dimension_semantics = [#tpu.dimension_semantics<parallel>], iteration_bounds = array<i64: 1>, scalar_prefetch = 0 : i64, scratch_operands = 0 : i64, tpu.core_type = #tpu.core_type<tc>, window_params = [{transform_indices = @transform_0, window_bounds = array<i64: 8, 75>}, {transform_indices = @transform_1, window_bounds = array<i64: 8, 28>}, {pipeline_mode = #tpu.pipeline_mode<synchronous>, transform_indices = @transform_2, window_bounds = array<i64: 75, 30>}, {pipeline_mode = #tpu.pipeline_mode<synchronous>, transform_indices = @transform_3, window_bounds = array<i64: 28, 30>}, {pipeline_mode = #tpu.pipeline_mode<synchronous>, transform_indices = @transform_4, window_bounds = array<i64: 1, 30>}, {pipeline_mode = #tpu.pipeline_mode<synchronous>, transform_indices = @transform_5, window_bounds = array<i64: 1, 30>}, {transform_indices = @transform_6, window_bounds = array<i64: 1, 1>}, {transform_indices = @transform_7, window_bounds = array<i64: 1, 8>}]} {
    %c0 = arith.constant 0 : index
    %c0_0 = arith.constant 0 : index
    %0 = vector.load %arg1[%c0, %c0_0] : memref<8x75xf32, #tpu.memory_space<vmem>>, vector<8x75xf32>
    %c0_1 = arith.constant 0 : index
    %c0_2 = arith.constant 0 : index
    %1 = vector.load %arg3[%c0_1, %c0_2] : memref<75x30xf32, #tpu.memory_space<vmem>>, vector<75x30xf32>
    %cst = arith.constant dense<0.000000e+00> : vector<8x30xf32>
    %2 = tpu.matmul %0, %1, %cst {dimension_numbers = #tpu.dot_dimension_numbers<[1], [0], [0], [1], [0, 0, 1, 1], [], []>} : vector<8x75xf32>, vector<75x30xf32>, vector<8x30xf32> -> vector<8x30xf32>
    %c0_3 = arith.constant 0 : index
    %c0_4 = arith.constant 0 : index
    %3 = vector.load %arg2[%c0_3, %c0_4] : memref<8x28xf32, #tpu.memory_space<vmem>>, vector<8x28xf32>
    %c0_5 = arith.constant 0 : index
    %c0_6 = arith.constant 0 : index
    %4 = vector.load %arg4[%c0_5, %c0_6] : memref<28x30xf32, #tpu.memory_space<vmem>>, vector<28x30xf32>
    %cst_7 = arith.constant dense<0.000000e+00> : vector<8x30xf32>
    %5 = tpu.matmul %3, %4, %cst_7 {dimension_numbers = #tpu.dot_dimension_numbers<[1], [0], [0], [1], [0, 0, 1, 1], [], []>} : vector<8x28xf32>, vector<28x30xf32>, vector<8x30xf32> -> vector<8x30xf32>
    %6 = arith.addf %2, %5 : vector<8x30xf32>
    %c0_8 = arith.constant 0 : index
    %c0_9 = arith.constant 0 : index
    %7 = vector.load %arg5[%c0_8, %c0_9] : memref<1x30xf32, #tpu.memory_space<vmem>>, vector<1x30xf32>
    %8 = vector.broadcast %7 : vector<1x30xf32> to vector<8x30xf32>
    %9 = arith.addf %6, %8 : vector<8x30xf32>
    %cst_10 = arith.constant 0.000000e+00 : f32
    %10 = vector.broadcast %cst_10 : f32 to vector<8x30xf32>
    %11 = arith.maximumf %9, %10 : vector<8x30xf32>
    %c0_11 = arith.constant 0 : index
    %c0_12 = arith.constant 0 : index
    %12 = vector.load %arg6[%c0_11, %c0_12] : memref<1x30xf32, #tpu.memory_space<vmem>>, vector<1x30xf32>
    "tpu.trace_start"() <{level = 10 : i32, message = "oh,bh->ob"}> : () -> ()
    %cst_13 = arith.constant dense<0.000000e+00> : vector<1x8xf32>
    %13 = tpu.matmul %12, %11, %cst_13 {dimension_numbers = #tpu.dot_dimension_numbers<[1], [1], [0], [0], [0, 0, 1, 0], [], []>} : vector<1x30xf32>, vector<8x30xf32>, vector<1x8xf32> -> vector<1x8xf32>
    "tpu.trace_stop"() : () -> ()
    %c0_14 = arith.constant 0 : index
    %c0_15 = arith.constant 0 : index
    %14 = memref.load %arg7[%c0_14, %c0_15] : memref<1x1xf32, #tpu.memory_space<smem>>
    %15 = vector.broadcast %14 : f32 to vector<1x8xf32>
    %16 = arith.addf %13, %15 : vector<1x8xf32>
    %c0_16 = arith.constant 0 : index
    %c0_17 = arith.constant 0 : index
    %17 = vector.load %arg8[%c0_16, %c0_17] : memref<1x8xf32, #tpu.memory_space<vmem>>, vector<1x8xf32>
    tpu.vector_store %arg8[%c0_16, %c0_17], %16 {strides = array<i32>} : memref<1x8xf32, #tpu.memory_space<vmem>>, vector<1x8xf32>,
    return
  }
  func.func @transform_0(%arg0: i32) -> (i32, i32) {
    %c0_i32 = arith.constant 0 : i32
    %c0_i32_0 = arith.constant 0 : i32
    return %arg0, %c0_i32 : i32, i32
  }
  func.func @transform_1(%arg0: i32) -> (i32, i32) {
    %c0_i32 = arith.constant 0 : i32
    %c0_i32_0 = arith.constant 0 : i32
    return %arg0, %c0_i32 : i32, i32
  }
  func.func @transform_2(%arg0: i32) -> (i32, i32) {
    %c0_i32 = arith.constant 0 : i32
    %c0_i32_0 = arith.constant 0 : i32
    %c0_i32_1 = arith.constant 0 : i32
    return %c0_i32, %c0_i32_0 : i32, i32
  }
  func.func @transform_3(%arg0: i32) -> (i32, i32) {
    %c0_i32 = arith.constant 0 : i32
    %c0_i32_0 = arith.constant 0 : i32
    %c0_i32_1 = arith.constant 0 : i32
    return %c0_i32, %c0_i32_0 : i32, i32
  }
  func.func @transform_4(%arg0: i32) -> (i32, i32) {
    %c0_i32 = arith.constant 0 : i32
    %c0_i32_0 = arith.constant 0 : i32
    %c0_i32_1 = arith.constant 0 : i32
    return %c0_i32, %c0_i32_0 : i32, i32
  }
  func.func @transform_5(%arg0: i32) -> (i32, i32) {
    %c0_i32 = arith.constant 0 : i32
    %c0_i32_0 = arith.constant 0 : i32
    %c0_i32_1 = arith.constant 0 : i32
    return %c0_i32, %c0_i32_0 : i32, i32
  }
  func.func @transform_6(%arg0: i32) -> (i32, i32) {
    %c0_i32 = arith.constant 0 : i32
    %c0_i32_0 = arith.constant 0 : i32
    %c0_i32_1 = arith.constant 0 : i32
    return %c0_i32, %c0_i32_0 : i32, i32
  }
  func.func @transform_7(%arg0: i32) -> (i32, i32) {
    %c0_i32 = arith.constant 0 : i32
    %c0_i32_0 = arith.constant 0 : i32
    return %c0_i32, %arg0 : i32, i32
  }
}

</mosaic_0001>

<bundles_post_ra>
// kernel: tpu_custom_call.1
= control target key start
LH: loop header
LB: loop body
LE: loop exit
PB: predicated region body
PF: predicated region fallthrough
CT: control target
= control target key end

     0   :  { %vm76_vm0 = vcmask 1042432   ;;  %vm48_vm1 = vcmask 1043456   ;;  %s289_s0 = inlined_call_operand.vmem [shape: f32[8,75], index: 0, kind: input, shape index: {}]   ;;  %s290_s1 = inlined_call_operand.vmem [shape: f32[8,28], index: 1, kind: input, shape index: {}]   ;;  %s291_s2 = inlined_call_operand.vmem [shape: f32[75,30], index: 2, kind: input, shape index: {}]   ;;  %s292_s3 = inlined_call_operand.vmem [shape: f32[28,30], index: 3, kind: input, shape index: {}]   ;;  %s293_s4 = inlined_call_operand.vmem [shape: f32[1,30], index: 4, kind: input, shape index: {}]   ;;  %s294_s5 = inlined_call_operand.vmem [shape: f32[1,30], index: 5, kind: input, shape index: {}]   ;;  %s295_s6 = inlined_call_operand.<no memory space> [shape: f32[1,1], index: 6, kind: input, shape index: {}]   ;;  %s296_s7 = inlined_call_operand.hbm [shape: f32[1,8], index: 7, kind: output, shape index: {}]  }
   0x1   :  { %v38_v0 = vld [vmem:[%s291_s2 + $0x48] sm:$0x7]  ;;  %v37_v1 = vld [vmem:[%s291_s2 + $0x40] sm:$0xff]  ;;  %v36_v2 = vld [vmem:[%s291_s2 + $0x38] sm:$0xff] }
   0x2   :  { %156 = vmatpush.msk.msra.mxu1 %vm76_vm0, %v38_v0  ;;  %v43_v3 = vld [vmem:[%s292_s3 + $0x18] sm:$0xf]  ;;  %v42_v4 = vld [vmem:[%s292_s3 + $0x10] sm:$0xff]  ;;  %v41_v6 = vld [vmem:[%s292_s3 + $0x8] sm:$0xff] }
   0x3   :  { %154 = vmatpush.msk.msra.mxu0 %vm48_vm1, %v43_v3  ;;  %v35_v5 = vld [vmem:[%s291_s2 + $0x30] sm:$0xff] }
   0x4   :  { %87 = vmatpush.msra.mxu1 %v37_v1 }
   0x5   :  { %65 = vmatpush.msra.mxu0 %v42_v4 }
   0x6   :  { %88 = vmatpush.msra.mxu1 %v36_v2 }
   0x7   :  { %13 = vsyncpa [#allocation4], 0  ;;  %v34_v7 = vld [vmem:[%s291_s2 + $0x28] sm:$0xff]  ;;  %v40_v8 = vld [vmem:[%s292_s3] sm:$0xff]  ;;  %66 = vmatpush.msra.mxu0 %v41_v6  ;;  %vm44_vm2 = vcmask 228352   ;;  %vm72_vm3 = vcmask 613376   ;;  %v108_v23 = vstv %s295_s6 }
   0x8   :  { %89 = vmatpush.msra.mxu1 %v35_v5  ;;  %v39_v9 = vld [vmem:[%s290_s1] sm:$0xff]  ;;  %v32_v11 = vld [vmem:[%s291_s2 + $0x18] sm:$0xff]  ;;  %v31_v12 = vld [vmem:[%s291_s2 + $0x10] sm:$0xff]  ;;  %vm109_vm4 = vcmask 244736   ;;  %s188_s12 = smov [#allocation3]   ;;  %vm136_vm5 = vcmask 57344  }
   0x9   :  { %v33_v10 = vld [vmem:[%s291_s2 + $0x20] sm:$0xff]  ;;  %67 = vmatpush.msra.mxu0 %v40_v8  ;;  %v30_v13 = vld [vmem:[%s291_s2 + $0x8] sm:$0xff]  ;;  %s143_s13 = sshll.u32 %s188_s12, 4  ;;  %s144_s13 = int_to_ptr.vmem [resolvable:$true] %s143_s13 }
   0xa   :  { %90 = vmatpush.msra.mxu1 %v34_v7  ;;  %155 = vmatmul.msk.f32.vlgmr.msra.gmra.mxu0 %vm44_vm2, %v39_v9  ;;  %v29_v14 = vld [vmem:[%s291_s2] sm:$0xff] }
   0xb   :  { %v28_v15 = vld [vmem:[%s289_s0] sm:$0xff] }
   0xc   :  { %91 = vmatpush.msra.mxu1 %v33_v10  ;;  %v161_v17 = vld [vmem:[%s293_s4] ss:$0 sm:$0xff]  ;;  %s145_s4 = sshll.u32 %s296_s7, 4  ;;  %s146_s4 = int_to_ptr.hbm [resolvable:$true] %s145_s4 }
   0xd   :  { %v106_v22 = vld [vmem:[%s294_s5] sm:$0x1] }
   0xe   :  { %92 = vmatpush.msra.mxu1 %v32_v11 }
  0x10   :  { %93 = vmatpush.msra.mxu1 %v31_v12 }
  0x12   :  { %94 = vmatpush.msra.mxu1 %v30_v13 }
  0x14   :  { %95 = vmatpush.msra.mxu1 %v29_v14 }
  0x15   :  { %157 = vmatmul.msk.f32.vlgmr.msra.gmra.mxu1 %vm72_vm3, %v28_v15 }
  0x87   :  { %v69_v16 = vpop.f32.mrf.mxu0 }
  0x92   :  { %v97_v18 = vpop.f32.mrf.mxu1 }
  0x93   :  { %v98_v19 = vadd.f32 %v97_v18, %v69_v16 }
  0x95   :  { %v104_v20 = vadd.f32 %v161_v17, %v98_v19 }
  0x97   :  { %v105_v21 = vmax.f32 %v104_v20, 0.0 }
  0x99   :  { %158 = vmatpush.xpose.msk.msra.mxu2 %vm109_vm4, %v105_v21 }
  0x9c   :  { %159 = vmatmul.msk.f32.vlgmr.msra.gmra.mxu2 %vm109_vm4, %v106_v22 }
 0x11f   :  { %v133_v24 = vpop.f32.mrf.mxu2 }
 0x120   :  { %v134_v25 = vadd.f32 %v133_v24, %v108_v23 }
 0x122   :  { %137 = vst.msk [vmem:[#allocation3] sm:$0x1] %vm136_vm5, %v134_v25 }
 0x123   :  { %148 = dma.vmem_to_hbm [thread:$0]  %s144_s13, 16, %s146_s4, [#allocation4]  }
 0x124   :  { %186 = dma.done.wait [#allocation4], 16  }
 0x125   :  { %187 = vsyncadd [#allocation4], 4294967280 }
 0x126   :  { %153 = vsyncpa [#allocation4], 1 }

</bundles_post_ra>
